<compile_context>
chip_gen: v7x
topology: tpu7x:2x2x1
jax: 0.10.0
libtpu: 0.0.40
codegen_flags: <defaults>
</compile_context>

<pallas_src>
import math

import jax
import jax.numpy as jnp
from jax.experimental import pallas as pl
from jax.experimental.pallas import tpu as pltpu


def _round_up(x: int, m: int) -> int:
    return (x + m - 1) // m * m


# --------------------------------------------------------------------------
# Kernel: one batch tile of  logits = x @ W + b
#   x tile : (tb, Fp)  bf16
#   W      : (Fp, Np)  bf16  (VMEM-resident across all grid steps)
#   b      : (1,  Np)  f32
#   out    : (tb, Np)  bf16  (f32 accumulation + f32 bias add, cast at store)
# --------------------------------------------------------------------------
def head_linear_kernel(x_ref, w_ref, b_ref, o_ref):
    acc = jnp.dot(x_ref[...], w_ref[...], preferred_element_type=jnp.float32)
    o_ref[...] = (acc + b_ref[...]).astype(o_ref.dtype)


def pad_head_params(w, b):
    """Pad/cast the head parameters ONCE at model init (cache the result).

    w: (F, n_class) f32 -- transpose of PyTorch's (n_class, F) weight.
    b: (n_class,)   f32
    Returns (wp, bp): bf16 (Fp, Np) weight and f32 (1, Np) bias slab,
    Fp = round_up(F, 128), Np = round_up(max(n_class, 128), 128).
    """
    F, n_class = w.shape
    Fp = _round_up(F, 128)
    Np = _round_up(max(n_class, 128), 128)
    wp = jnp.pad(w.astype(jnp.bfloat16), ((0, Fp - F), (0, Np - n_class)))
    bp = jnp.pad(b.astype(jnp.float32).reshape(1, -1), ((0, 0), (0, Np - n_class)))
    return wp, bp


def head_linear(x, wp, bp, n_class, *, tile_b: int = 1024, min_grid: int = 4):
    """Replaced classification head: logits = x @ W + b.

    x : (B, F) pooled backbone features.  Expected path: bf16 with F already a
        multiple of 128 (true for both real backbones) -> zero wrapper ops on x.
    wp, bp : pre-padded params from pad_head_params().
    Returns (B, n_class) f32 logits.
    """
    B, F = x.shape
    Fp, Np = wp.shape

    # ---- Fallback path only: cast / pad x if the caller didn't. ----------
    # TODO(synk): for the full model, have the backbone emit bf16 pooled
    # features directly so this branch (an extra HBM pass over x) never runs.
    if x.dtype != jnp.bfloat16:
        x = x.astype(jnp.bfloat16)

    # ---- Batch tiling: pad only to a multiple of 8, pick a tile that evenly
    # divides the minimally padded batch, and keep >= min_grid steps so the
    # "parallel" axis can be sharded over v7x's two TensorCores. -------------
    B8 = _round_up(B, 8)
    max_tiles = max(B8 // 8, 1)                       # each tile >= 8 rows
    n_tiles = min(max(pl.cdiv(B8, tile_b), min_grid), max_tiles)
    tb = _round_up(pl.cdiv(B8, n_tiles), 8)
    n_tiles = pl.cdiv(B8, tb)
    Bp = n_tiles * tb

    pad_b, pad_f = Bp - B, Fp - F
    if pad_b or pad_f:
        x = jnp.pad(x, ((0, pad_b), (0, pad_f)))

    # Advisory cost estimate with the TRUE (unpadded) problem size.
    flops = 2 * B * F * n_class
    bytes_accessed = B * F * 2 + Fp * Np * 2 + Np * 4 + B * n_class * 2

    out = pl.pallas_call(
        head_linear_kernel,
        out_shape=jax.ShapeDtypeStruct((Bp, Np), jnp.bfloat16),
        grid_spec=pltpu.PrefetchScalarGridSpec(
            num_scalar_prefetch=0,
            grid=(n_tiles,),
            in_specs=[
                # Batch-tiled activations (double-buffered by the pipeline).
                pl.BlockSpec((tb, Fp), lambda i: (i, 0)),
                # Weight / bias: constant index_map -> VMEM-resident across steps.
                pl.BlockSpec((Fp, Np), lambda i: (0, 0)),
                pl.BlockSpec((1, Np), lambda i: (0, 0)),
            ],
            out_specs=pl.BlockSpec((tb, Np), lambda i: (i, 0)),
        ),
        compiler_params=pltpu.CompilerParams(
            dimension_semantics=("parallel",),      # shard batch steps over TCs
            vmem_limit_bytes=32 * 1024 * 1024,      # footprint is a few MiB
        ),
        cost_estimate=pl.CostEstimate(
            flops=flops, transcendentals=0, bytes_accessed=bytes_accessed
        ),
    )(x, wp, bp)

    # Tiny slice of the bf16 slab; final logits returned in f32.
    return out[:B, :n_class].astype(jnp.float32)


def init_head_params(key, in_features, n_class):
    """Mirrors nn.Linear's default init (kaiming_uniform a=sqrt(5) + uniform bias)."""
    kw, kb = jax.random.split(key)
    bound = 1.0 / math.sqrt(in_features)
    # Stored as (in_features, n_class): transpose of PyTorch's (n_class, in_features).
    w = jax.random.uniform(kw, (in_features, n_class), jnp.float32, -bound, bound)
    b = jax.random.uniform(kb, (n_class,), jnp.float32, -bound, bound)
    return w, b


def reference_head(x, w, b):
    return x @ w + b


if __name__ == "__main__":
    key = jax.random.PRNGKey(0)
    k_x, k_p, k_x2, k_p2 = jax.random.split(key, 4)

    # ---------------- Expected path: bf16 features, 128-aligned F ----------
    B, in_features, n_class = 10, 256, 5        # small stand-in (swin: F=1024)
    x = jax.random.normal(k_x, (B, in_features), jnp.float32)
    w, b = init_head_params(k_p, in_features, n_class)
    wp, bp = pad_head_params(w, b)              # done once, reused every call

    x_bf16 = x.astype(jnp.bfloat16)             # backbone would emit bf16
    out = jax.block_until_ready(head_linear(x_bf16, wp, bp, n_class))
    ref = reference_head(x_bf16.astype(jnp.float32), w, b)
    assert out.shape == (B, n_class) and out.dtype == jnp.float32
    assert jnp.allclose(out, ref, atol=5e-2, rtol=5e-2), float(
        jnp.max(jnp.abs(out - ref))
    )

    # ------------- Fallback path: f32 features, unaligned F / B ------------
    B2, F2, n_class2 = 6, 200, 7
    x2 = jax.random.normal(k_x2, (B2, F2), jnp.float32)
    w2, b2 = init_head_params(k_p2, F2, n_class2)
    wp2, bp2 = pad_head_params(w2, b2)
    out2 = jax.block_until_ready(head_linear(x2, wp2, bp2, n_class2))
    ref2 = reference_head(x2, w2, b2)
    assert out2.shape == (B2, n_class2)
    assert jnp.allclose(out2, ref2, atol=5e-2, rtol=5e-2), float(
        jnp.max(jnp.abs(out2 - ref2))
    )

    print("KERNEL_OK")
</pallas_src>

<mosaic_0001>
module attributes {stable_mosaic.version = 11 : i64} {
  func.func @head_linear_kernel(%arg0: i32, %arg1: memref<8x256xbf16, #tpu.memory_space<vmem>>, %arg2: memref<256x128xbf16, #tpu.memory_space<vmem>>, %arg3: memref<1x128xf32, #tpu.memory_space<vmem>>, %arg4: memref<8x128xbf16, #tpu.memory_space<vmem>>) attributes {dimension_semantics = [#tpu.dimension_semantics<parallel>], iteration_bounds = array<i64: 2>, scalar_prefetch = 0 : i64, scratch_operands = 0 : i64, tpu.core_type = #tpu.core_type<tc>, window_params = [{transform_indices = @transform_0, window_bounds = array<i64: 8, 256>}, {pipeline_mode = #tpu.pipeline_mode<synchronous>, transform_indices = @transform_1, window_bounds = array<i64: 256, 128>}, {pipeline_mode = #tpu.pipeline_mode<synchronous>, transform_indices = @transform_2, window_bounds = array<i64: 1, 128>}, {transform_indices = @transform_3, window_bounds = array<i64: 8, 128>}]} {
    %c0 = arith.constant 0 : index
    %c0_0 = arith.constant 0 : index
    %0 = vector.load %arg1[%c0, %c0_0] : memref<8x256xbf16, #tpu.memory_space<vmem>>, vector<8x256xbf16>
    %c0_1 = arith.constant 0 : index
    %c0_2 = arith.constant 0 : index
    %1 = vector.load %arg2[%c0_1, %c0_2] : memref<256x128xbf16, #tpu.memory_space<vmem>>, vector<256x128xbf16>
    %cst = arith.constant dense<0.000000e+00> : vector<8x128xf32>
    %2 = tpu.matmul %0, %1, %cst {dimension_numbers = #tpu.dot_dimension_numbers<[1], [0], [0], [1], [0, 0, 1, 1], [], []>} : vector<8x256xbf16>, vector<256x128xbf16>, vector<8x128xf32> -> vector<8x128xf32>
    %c0_3 = arith.constant 0 : index
    %c0_4 = arith.constant 0 : index
    %3 = vector.load %arg3[%c0_3, %c0_4] : memref<1x128xf32, #tpu.memory_space<vmem>>, vector<1x128xf32>
    %4 = vector.broadcast %3 : vector<1x128xf32> to vector<8x128xf32>
    %5 = arith.addf %2, %4 : vector<8x128xf32>
    %6 = arith.truncf %5 : vector<8x128xf32> to vector<8x128xbf16>
    %c0_5 = arith.constant 0 : index
    %c0_6 = arith.constant 0 : index
    %7 = vector.load %arg4[%c0_5, %c0_6] : memref<8x128xbf16, #tpu.memory_space<vmem>>, vector<8x128xbf16>
    tpu.vector_store %arg4[%c0_5, %c0_6], %6 {strides = array<i32>} : memref<8x128xbf16, #tpu.memory_space<vmem>>, vector<8x128xbf16>,
    return
  }
  func.func @transform_0(%arg0: i32) -> (i32, i32) {
    %c0_i32 = arith.constant 0 : i32
    %c0_i32_0 = arith.constant 0 : i32
    return %arg0, %c0_i32 : i32, i32
  }
  func.func @transform_1(%arg0: i32) -> (i32, i32) {
    %c0_i32 = arith.constant 0 : i32
    %c0_i32_0 = arith.constant 0 : i32
    %c0_i32_1 = arith.constant 0 : i32
    return %c0_i32, %c0_i32_0 : i32, i32
  }
  func.func @transform_2(%arg0: i32) -> (i32, i32) {
    %c0_i32 = arith.constant 0 : i32
    %c0_i32_0 = arith.constant 0 : i32
    %c0_i32_1 = arith.constant 0 : i32
    return %c0_i32, %c0_i32_0 : i32, i32
  }
  func.func @transform_3(%arg0: i32) -> (i32, i32) {
    %c0_i32 = arith.constant 0 : i32
    %c0_i32_0 = arith.constant 0 : i32
    return %arg0, %c0_i32 : i32, i32
  }
}

</mosaic_0001>

<bundles_post_ra>
// kernel: tpu_custom_call.1
= control target key start
LH: loop header
LB: loop body
LE: loop exit
PB: predicated region body
PF: predicated region fallthrough
CT: control target
= control target key end

     0   :  { %8 = vsyncpa [#allocation3], 0  ;;  %s971_s0 = inlined_call_operand.hbm [shape: bf16[16,256], index: 0, kind: input, shape index: {}]   ;;  %s972_s1 = inlined_call_operand.hbm [shape: bf16[256,128], index: 1, kind: input, shape index: {}]   ;;  %s973_s2 = inlined_call_operand.vmem [shape: f32[1,128], index: 2, kind: input, shape index: {}]   ;;  %s974_s3 = inlined_call_operand.hbm [shape: bf16[16,128], index: 3, kind: output, shape index: {}]  }
   0x1   :  { %10 = vsyncpa [#allocation3 + $0x1], 0 }
   0x2   :  { %11 = vsyncpa [#allocation6], 0 }
   0x3   :  { %12 = vsyncpa [#allocation4], 0 }
   0x4   :  { %14 = vsyncpa [#allocation4 + $0x1], 0  ;;  %s771_s12 = smov 0   ;;  %s773_s13 = smov 0  }
   0x5   :  { %s775_s14 = smov 0   ;;  %s777_s15 = smov 0  }
   0x6 LB: > { %s792_s16 = sadd.s32 4294967295, %s744_s15   ;;  %s482_s17 = sadd.s32 4294967294, %s744_s15   ;;  %s744_s15 = sphi %s777_s15, %s994_s15   ;;  %s740_s14 = sphi %s775_s14, %s993_s14   ;;  %s736_s13 = sphi %s773_s13, %s992_s13   ;;  %s732_s12 = sphi %s771_s12, %s991_s12  }
   0x7   : > { %p40_p0 = scmp.ne.s32.totalorder %s736_s13, %s732_s12  ;;  %p975_p1 = scmp.eq.s32.totalorder %s792_s16, 0 }
   0x8   : > { %p112_p3 = scmp.eq.s32.totalorder %s482_s17, 1  ;;  %p483_p5 = scmp.ge.s32.totalorder %s744_s15, 1 }
   0x9   : > { %p801_p4 = por %p975_p1, %p40_p0  ;;  %p119_p7 = scmp.lt.s32.totalorder %s744_s15, 3 }
   0xa   : > { %p806_p6 = por %p112_p3, %p40_p0  ;;  %s746_s21 = smov [#allocation5]  }
   0xb   : > { %s978_s18 = scalar_select %p801_p4, 1, 0 }
   0xc   : > { %s979_s19 = scalar_select %p806_p6, 1, 0 }
   0xd   : > { %p811_p8 = pnand %p483_p5, %p119_p7  ;;  %s131_s22 = sshll.u32 %s746_s21, 4  ;;  %s815_s22 = int_to_ptr.vmem [resolvable:$true] %s131_s22 }
   0xe   : > { %s827_s24 = sadd.s32 1, %s744_s15   ;;  %s27_s25 = sadd.s32 1, %s740_s14 }
   0xf   : > { %s980_s20 = scalar_select %p811_p8, 1, 0 }
  0x10   : > { %p547_p9 = pneg %p811_p8  ;;  %s24_s26 = ssub.s32 %s744_s15, %s827_s24 }
  0x11   : > { %s616_s29 = scalar_lea.hbm %s972_s1, 2048 }
  0x12   : > { %p822_p11 = pnand %p547_p9, %p975_p1  ;;  %p617_p12 = scmp.ne.s32.totalorder %s972_s1, %s616_s29 }
  0x13   : > { %p623_p5 = scmp.lt.u32.totalorder %s616_s29, %s972_s1 }
  0x14   : > { %p618_p13 = pneg %p822_p11 }
  0x16   : > { %p619_p0 = pnand %p618_p13, %p617_p12 }
  0x18   : > { %p620_p3 = pneg %p619_p0 }
  0x1a   : > { %p625_p7 = pnand %p623_p5, %p620_p3 }
  0x1c   : > { %628 = shalt.err (!%p625_p7)
}
  0x1d   : > { %s629_s7 = scalar_lea.vmem %s815_s22, 2048  ;;  %p637_p2 = scmp.lt.s32.totalorder %s815_s22, %s815_s22 }
  0x1e   : > { %p630_p9 = scmp.ne.s32.totalorder %s815_s22, %s629_s7  ;;  %p638_p6 = scmp.lt.s32.totalorder %s629_s7, %s629_s7 }
  0x20   : > { %p632_p10 = pnand %p630_p9, %p618_p13  ;;  %p639_p4 = por %p638_p6, %p637_p2 }
  0x22   : > { %p633_p1 = pneg %p632_p10 }
  0x24   : > { %p640_p8 = pnand %p639_p4, %p633_p1 }
  0x26   : > { %643 = shalt.err (!%p640_p8)
}
  0x27   : > { %s747_s8 = smov 64   ;;  %s748_s9 = smov 4  }
  0x28   : > { %550 = dma.hbm_to_vmem [thread:$0]  (!%p822_p11), %s972_s1, 2048, %s815_s22, [#allocation6], %s747_s8, %s747_s8, %s748_s9  }
  0x29   : > { %p25_p2 = scmp.eq.s32.totalorder %s24_s26, 0  ;;  %p34_p1 = scmp.ne.s32.totalorder %s740_s14, %s736_s13 }
  0x2a   : > { %p35_p4 = scmp.eq.s32.totalorder %s744_s15, 0  ;;  %p560_p6 = scmp.lt.s32.totalorder %s744_s15, 2 }
  0x2b   : > { %s858_s17 = scalar_select %p25_p2, %s740_s14, %s27_s25  }
  0x2c   : > { %p36_p8 = por %p35_p4, %p34_p1  ;;  %p982_p10 = scmp.eq.s32.totalorder %s792_s16, 1 }
  0x2d   : > { %s148_s27 = sand.u32 1, %s740_s14   ;;  %s516_s28 = sshll.u32 %s744_s15, 7 }
  0x2e   : > { %p862_p12 = por %p982_p10, %p34_p1  ;;  %s486_s29 = sshll.u32 %s148_s27, 3 }
  0x2f   : > { %s871_s4 = scalar_lea.hbm %s971_s0, %s516_s28  ;;  %s152_s22 = scalar_lea.vmem [#allocation2], %s486_s29 }
  0x30   : > { %s160_s25 = sshll.u32 %s152_s22, 4  ;;  %p873_p11 = pnand %p560_p6, %p36_p8  ;;  %s877_s25 = int_to_ptr.vmem [resolvable:$true] %s160_s25 }
  0x31   : > { %s149_s5 = scalar_lea.sflag [#allocation3], %s148_s27  ;;  %s644_s6 = scalar_lea.hbm %s871_s4, 128 }
  0x32   : > { %p645_p13 = scmp.ne.s32.totalorder %s871_s4, %s644_s6  ;;  %p646_p0 = pneg %p873_p11 }
  0x33   : > { %s649_s9 = scalar_lea.hbm %s971_s0, 256  ;;  %p650_p7 = scmp.lt.u32.totalorder %s871_s4, %s971_s0 }
  0x34   : > { %p647_p3 = pnand %p646_p0, %p645_p13  ;;  %p651_p9 = scmp.lt.u32.totalorder %s649_s9, %s644_s6 }
  0x35   : > { %p653_p1 = scmp.lt.u32.totalorder %s644_s6, %s871_s4 }
  0x36   : > { %p648_p5 = pneg %p647_p3  ;;  %p652_p2 = por %p651_p9, %p650_p7 }
  0x38   : > { %p654_p4 = por %p653_p1, %p652_p2 }
  0x3a   : > { %p655_p6 = pnand %p654_p4, %p648_p5 }
  0x3c   : > { %658 = shalt.err (!%p655_p6)
}
  0x3d   : > { %s659_s27 = scalar_lea.vmem %s877_s25, 128  ;;  %s749_s28 = smov [#allocation2]  }
  0x3e   : > { %p660_p8 = scmp.ne.s32.totalorder %s877_s25, %s659_s27  ;;  %s664_s29 = sshll.u32 %s749_s28, 4  ;;  %s665_s29 = int_to_ptr.vmem [resolvable:$false] %s664_s29 }
  0x3f   : > { %s666_s23 = scalar_lea.vmem %s665_s29, 256  ;;  %p667_p3 = scmp.lt.s32.totalorder %s877_s25, %s665_s29 }
  0x40   : > { %p662_p10 = pnand %p660_p8, %p646_p0  ;;  %p668_p7 = scmp.lt.s32.totalorder %s666_s23, %s659_s27 }
  0x42   : > { %p663_p13 = pneg %p662_p10  ;;  %p669_p9 = por %p668_p7, %p667_p3 }
  0x44   : > { %p670_p2 = pnand %p669_p9, %p663_p13 }
  0x46   : > { %673 = shalt.err (!%p670_p2)
}
  0x47   : > { %554 = dma.hbm_to_vmem [thread:$0]  (!%p873_p11), %s871_s4, 128, %s877_s25, %s149_s5  }
  0x48   : > { %p985_p5 = scmp.ne.s32.totalorder %s980_s20, 0 }
  0x49   : > { %s907_s30 = sand.u32 (!%p985_p5), 1, %s736_s13   ;;  %p986_p0 = scmp.ne.s32.totalorder (!%p985_p5), %s978_s18, 0 }
  0x4a   : > { %169 = sbr.rel (%p985_p5) target bundleno = 351 (0x15f), region = 32  ;;  %s490_s22 = sshll.u32 (!%p985_p5), %s907_s30, 3 }
  0x4b   : > { %s172_s6 = scalar_lea.sflag (!%p985_p5), [#allocation3], %s907_s30  ;;  %s175_s7 = scalar_lea.vmem (!%p985_p5), [#allocation2], %s490_s22 }
  0x51   : > { %719 = dma.done.wait (%p986_p0), %s172_s6, 128  }
  0x52   : > { %721 = vsyncadd (%p986_p0), %s172_s6, 4294967168  ;;  %p987_p1 = scmp.eq.s32.totalorder %s792_s16, 0 }
  0x54   : > { %723 = dma.done.wait (%p987_p1), [#allocation6], 2048   ;;  %p988_p11 = pmov %p987_p1 }
  0x55   : > { %v598_v0 = vld [vmem:[#allocation5 + $0x40] sm:$0xff]   ;;  %v600_v2 = vld [vmem:[#allocation5 + $0x48] sm:$0xff]   ;;  %v602_v4 = vld [vmem:[#allocation5 + $0x50] sm:$0xff]   ;;  %s492_s18 = sshll.u32 %s907_s30, 2  ;;  %s513_s25 = sshll.u32 %s792_s16, 6 }
  0x56   : > { %725 = vsyncadd (%p988_p11), [#allocation6], 4294965248  ;;  %v599_v1 = vld [vmem:[#allocation5] sm:$0xff]   ;;  %517 = vmatprep.subr.bf16.mxu0 %v598_v0  ;;  %v601_v3 = vld [vmem:[#allocation5 + $0x8] sm:$0xff]   ;;  %s201_s26 = scalar_lea.vmem [#allocation7], %s492_s18  ;;  %s927_s10 = scalar_lea.hbm %s974_s3, %s513_s25 }
  0x57   : > { %518 = vmatpush3.bf16.msra.mxu0 %v599_v1  ;;  %v603_v5 = vld [vmem:[#allocation5 + $0x10] sm:$0xff]   ;;  %v604_v6 = vld [vmem:[#allocation5 + $0x58] sm:$0xff]   ;;  %v606_v8 = vld [vmem:[#allocation5 + $0x60] sm:$0xff]   ;;  %s402_s5 = sshll.u32 %s201_s26, 4  ;;  %s389_s11 = scalar_lea.sflag [#allocation4], %s907_s30  ;;  %s929_s5 = int_to_ptr.vmem [resolvable:$true] %s402_s5 }
  0x58   : > { %519 = vmatprep.subr.bf16.mxu0 %v600_v2  ;;  %v605_v7 = vld [vmem:[#allocation5 + $0x18] sm:$0xff]   ;;  %v607_v9 = vld [vmem:[#allocation5 + $0x20] sm:$0xff]   ;;  %v608_v10 = vld [vmem:[#allocation5 + $0x68] sm:$0xff]   ;;  %s674_s27 = scalar_lea.vmem %s929_s5, 64  ;;  %s750_s16 = smov [#allocation7]  }
  0x59   : > { %v203_v11 = vld [vmem:[%s175_s7] sm:$0xff]  ;;  %v609_v13 = vld [vmem:[#allocation5 + $0x28] sm:$0xff]   ;;  %p675_p4 = scmp.ne.s32.totalorder %s929_s5, %s674_s27  ;;  %s678_s28 = sshll.u32 %s750_s16, 4  ;;  %s679_s28 = int_to_ptr.vmem [resolvable:$false] %s678_s28 }
  0x5a   : > { %v495_v12 = vcombine.high %v203_v11, %v203_v11  ;;  %v610_v14 = vld [vmem:[#allocation5 + $0x70] sm:$0xff]   ;;  %v612_v16 = vld [vmem:[#allocation5 + $0x78] sm:$0xff]   ;;  %v494_v18 = vcombine.low %v203_v11, %v203_v11  ;;  %s680_s29 = scalar_lea.vmem %s679_s28, 128  ;;  %p681_p10 = scmp.lt.s32.totalorder %s929_s5, %s679_s28 }
  0x5b   : > { %520 = vmatpush3.bf16.msra.mxu0 %v601_v3  ;;  %v611_v15 = vld [vmem:[#allocation5 + $0x30] sm:$0xff]   ;;  %v613_v17 = vld [vmem:[#allocation5 + $0x38] sm:$0xff]   ;;  %p676_p6 = pnand %p675_p4, %p862_p12  ;;  %p682_p13 = scmp.lt.s32.totalorder %s680_s29, %s674_s27 }
  0x5c   : > { %521 = vmatprep.subr.bf16.mxu0 %v602_v4  ;;  %378 = vmatprep.mubr.bf16.mxu0 %v495_v12  ;;  %v493_v20 = vld [vmem:[%s973_s2] ss:$0 sm:$0xff] }
  0x5d   : > { %p677_p8 = pneg %p676_p6  ;;  %p683_p3 = por %p682_p13, %p681_p10 }
  0x5f   : > { %522 = vmatpush3.bf16.msra.mxu0 %v603_v5  ;;  %p684_p7 = pnand %p683_p3, %p677_p8 }
  0x60   : > { %523 = vmatprep.subr.bf16.mxu0 %v604_v6 }
  0x63   : > { %524 = vmatpush3.bf16.msra.mxu0 %v605_v7 }
  0x64   : > { %525 = vmatprep.subr.bf16.mxu0 %v606_v8 }
  0x67   : > { %526 = vmatpush3.bf16.msra.mxu0 %v607_v9 }
  0x68   : > { %527 = vmatprep.subr.bf16.mxu0 %v608_v10 }
  0x6b   : > { %528 = vmatpush3.bf16.msra.mxu0 %v609_v13 }
  0x6c   : > { %529 = vmatprep.subr.bf16.mxu0 %v610_v14 }
  0x6f   : > { %530 = vmatpush3.bf16.msra.mxu0 %v611_v15 }
  0x70   : > { %531 = vmatprep.subr.bf16.mxu0 %v612_v16 }
  0x73   : > { %532 = vmatpush3.bf16.msra.mxu0 %v613_v17 }
  0x76   : > { %379 = vmatmul.mubr.bf16.vlgmr.msra.gmra.mrb[0].mxu0 %v494_v18 }
 0x149   : > { %v533_v19 = vpop.f32.mrb[0].mxu0 }
 0x14a   : > { %v534_v21 = vpop.f32.mrb[1].mxu0 }
 0x14b   : > { %v535_v22 = vadd.f32 %v534_v21, %v533_v19  ;;  %v536_v23 = vpop.f32.mrb[2].mxu0 }
 0x14c   : > { %v537_v24 = vpop.f32.mrb[3].mxu0 }
 0x14d   : > { %v381_v25 = vadd.f32 %v535_v22, %v493_v20 }
 0x14f   : > { %v386_v26 = vpack.c.bf16 %v381_v25, %v381_v25 }
 0x151   : > { %387 = vst [vmem:[%s201_s26] sm:$0xf] %v386_v26 }
 0x152   : > { %687 = shalt.err (!%p684_p7)
}
 0x153   : > { %s688_s23 = scalar_lea.hbm %s927_s10, 64  ;;  %s692_s6 = scalar_lea.hbm %s974_s3, 128 }
 0x154   : > { %p689_p9 = scmp.ne.s32.totalorder %s927_s10, %s688_s23  ;;  %p693_p0 = scmp.lt.u32.totalorder %s927_s10, %s974_s3 }
 0x155   : > { %p694_p1 = scmp.lt.u32.totalorder %s692_s6, %s688_s23  ;;  %p696_p4 = scmp.lt.u32.totalorder %s688_s23, %s927_s10 }
 0x156   : > { %p690_p2 = pnand %p689_p9, %p862_p12 }
 0x157   : > { %p695_p11 = por %p694_p1, %p693_p0 }
 0x158   : > { %p691_p5 = pneg %p690_p2 }
 0x159   : > { %p697_p6 = por %p696_p4, %p695_p11 }
 0x15b   : > { %p698_p8 = pnand %p697_p6, %p691_p5 }
 0x15d   : > { %701 = shalt.err (!%p698_p8)
}
 0x15e   : > { %545 = dma.vmem_to_hbm [thread:$0]  (%p862_p12), %s929_s5, 64, %s927_s10, %s389_s11  }
 0x15f PF: > { %s414_s20 = sand.u32 1, %s732_s12   ;;  %p989_p10 = scmp.ne.s32.totalorder %s979_s19, 0 }
 0x160   : > { %p990_p13 = scmp.ge.s32.totalorder %s744_s15, 2  ;;  %s415_s4 = scalar_lea.sflag [#allocation4], %s414_s20 }
 0x162   : > { %p556_p3 = pnand %p990_p13, %p989_p10 }
 0x164   : > { %727 = dma.done.wait (!%p556_p3), %s415_s4, 64  }
 0x165   : > { %729 = vsyncadd (!%p556_p3), %s415_s4, 4294967232  ;;  %p17_p7 = scmp.ge.s32.totalorder %s827_s24, 4   ;;  %s991_s12 = smov %s736_s13 }
 0x166   : > { %s992_s13 = smov %s740_s14  ;;  %s993_s14 = smov %s858_s17 }
 0x167   : > { %s994_s15 = smov %s827_s24  ;;  %19 = sbr.rel (!%p17_p7) target bundleno = 6 (0x6), region = 81 }
 0x16e   :  { %420 = vsyncpa [#allocation3], 1 }
 0x16f   :  { %422 = vsyncpa [#allocation3 + $0x1], 1 }
 0x170   :  { %423 = vsyncpa [#allocation6], 1 }
 0x171   :  { %424 = vsyncpa [#allocation4], 1 }
 0x172   :  { %426 = vsyncpa [#allocation4 + $0x1], 1 }

</bundles_post_ra>
